<compile_context>
chip_gen: v5e
topology: v5e:2x2
jax: 0.10.0
libtpu: 0.0.40
codegen_flags: <defaults>
</compile_context>

<pallas_src>
import functools

import jax
import jax.numpy as jnp
import numpy as np
from jax.experimental import pallas as pl
from jax.experimental.pallas import tpu as pltpu


# ----------------------------------------------------------------------------
# PE table construction (buffer setup — plain numpy/JAX glue)
# ----------------------------------------------------------------------------
def make_pe_table(max_len: int, d_model: int, dtype=jnp.float32):
    position = np.arange(max_len, dtype=np.float32)[:, None]            # (L, 1)
    div_term = np.exp(
        np.arange(0, d_model, 2, dtype=np.float32) * (-np.log(10000.0) / d_model)
    )                                                                    # (D/2,)
    pe = np.zeros((max_len, d_model), dtype=np.float32)
    pe[:, 0::2] = np.sin(position * div_term)
    pe[:, 1::2] = np.cos(position * div_term)
    return jnp.asarray(pe, dtype)                                        # (L, D)


# ----------------------------------------------------------------------------
# Kernels
# ----------------------------------------------------------------------------
def _pe_slice(x_ref, pe_ref):
    """PE block for this row tile: either the tiled block or a slice of the
    VMEM-resident full table (only used when TR divides R exactly)."""
    tr = x_ref.shape[1]
    if pe_ref.shape[0] == tr:
        return pe_ref[...]
    start = pl.multiple_of(pl.program_id(0) * tr, 8)
    return pe_ref[pl.ds(start, tr), :]


def _pe_add_kernel(x_ref, pe_ref, o_ref):
    # x_ref/o_ref: (1, TR, C); pe_ref: (TR, C) or (R, C) resident.
    pe = _pe_slice(x_ref, pe_ref)
    y = x_ref[...].astype(jnp.float32) + pe.astype(jnp.float32)
    o_ref[...] = y.astype(o_ref.dtype)


def _pe_add_dropout_kernel(seed_ref, x_ref, pe_ref, o_ref, *, threshold, scale):
    # Inverted dropout via the TPU hardware PRNG; math kept in fp32 until the
    # final store (avoids mixed bf16 VALU ops on v5e).
    pid = pl.program_id(0) * pl.num_programs(1) + pl.program_id(1)
    # Decorrelate block streams: mix the flat program index with a large odd
    # constant (Knuth multiplicative hash) instead of consecutive seeds.
    pltpu.prng_seed(seed_ref[0] ^ (pid * jnp.int32(-1640531527)))
    pe = _pe_slice(x_ref, pe_ref)
    y = x_ref[...].astype(jnp.float32) + pe.astype(jnp.float32)
    bits = pltpu.bitcast(pltpu.prng_random_bits(y.shape), jnp.uint32)
    keep = bits >= jnp.uint32(threshold)        # P(drop) = threshold / 2^32 = rate
    o_ref[...] = jnp.where(keep, y * jnp.float32(scale), 0.0).astype(o_ref.dtype)


# ----------------------------------------------------------------------------
# Layout / tiling helpers
# ----------------------------------------------------------------------------
_PE_RESIDENT_BYTES = 4 << 20   # keep the whole PE table in VMEM below this


def _chip_params():
    """(target_tile_bytes, vmem_limit_bytes) per chip generation."""
    vmem_phys = 128 * 1024 * 1024
    try:
        info = pltpu.get_tpu_info()
        vmem_phys = int(getattr(info, "vmem_capacity_bytes", vmem_phys))
    except Exception:
        pass
    tile_bytes = 4 << 20                       # ~4 MiB x-tile: near HBM roofline
    if vmem_phys <= 64 * 1024 * 1024:          # v7x-class: 64 MiB physical / TC
        return tile_bytes, 40 * 1024 * 1024
    return tile_bytes, 64 * 1024 * 1024        # v5e/v6e: 128 MiB physical


def _flatten_layout(S, D, itemsize, tile_bytes):
    """Pick a lane-dense per-batch 2D view (R rows, C cols).
    Returns (R, C, D_pad); D_pad > D means the wrapper pads the lane dim."""
    if D % 128 == 0:
        return S, D, D
    total = S * D
    if total % 128 == 0:
        # Widest multiple-of-128 column count that divides S*D and respects
        # the tile byte budget (fewer, longer contiguous DMA rows per tile).
        max_c = max(128, min(total, tile_bytes // max(1, itemsize)))
        best, c = 128, 256
        while c <= max_c:
            if total % c == 0:
                best = c
            c += 128
        return total // best, best, D
    # Final fallback: pad the lane dim to the next multiple of 128 in the
    # wrapper and slice the output — never emit a narrow masked-store kernel.
    d_pad = ((D + 127) // 128) * 128
    return S, d_pad, d_pad


def _row_tile(R, C, x_itemsize, tile_bytes, batch):
    """Row tile: sublane-pack aware, ~tile_bytes per buffer, grid-size guard."""
    sub = 8 * max(1, 4 // max(1, x_itemsize))          # 8 f32 / 16 bf16 / 32 int8
    row_bytes = C * max(x_itemsize, 4)                 # pe rows are fp32
    budget = max(sub, (tile_bytes // row_bytes) // sub * sub)
    tr = min(R, budget)
    # Keep total grid >= ~8 steps when the problem allows, so both v7x TCs get
    # work and the 2-deep pipeline stays full.
    want_row_tiles = -(-8 // max(1, batch))
    if want_row_tiles > 1 and R > sub * want_row_tiles:
        cap = max(sub, (-(-R // want_row_tiles)) // sub * sub)
        tr = min(tr, cap)
    if tr >= R:
        return R
    return max(sub, (tr // sub) * sub)


# ----------------------------------------------------------------------------
# Wrapper
# ----------------------------------------------------------------------------
def positional_encoding(x, pe_table, *, dropout_rate=0.1, training=False, seed=0):
    B, S, D = x.shape
    pe = pe_table[:S, :].astype(jnp.float32)   # fp32 add happens in-kernel
    out_dtype = x.dtype
    # TODO(synk): torch promotes bf16/fp16 x + fp32 pe buffer to an fp32 result;
    # here the add is done in fp32 in-kernel but the output keeps x.dtype.

    if training and dropout_rate >= 1.0:
        return jnp.zeros_like(x)               # everything dropped

    tile_bytes, vmem_limit = _chip_params()
    R, C, D_pad = _flatten_layout(S, D, x.dtype.itemsize, tile_bytes)

    if D_pad != D:
        x_in = jnp.pad(x, ((0, 0), (0, 0), (0, D_pad - D)))
        pe_in = jnp.pad(pe, ((0, 0), (0, D_pad - D)))
    else:
        x_in, pe_in = x, pe

    x2 = x_in.reshape(B, R, C)
    pe2 = pe_in.reshape(R, C)

    TR = _row_tile(R, C, x.dtype.itemsize, tile_bytes, B)
    grid = (pl.cdiv(R, TR), B)                 # batch innermost -> PE block resident

    # Keep the whole PE table in VMEM when small and alignment allows (frees a
    # double-buffer pair; removes per-step PE DMA descriptor setup).
    pe_resident = (pe2.size * 4 <= _PE_RESIDENT_BYTES) and (R % TR == 0)
    pe_block = (R, C) if pe_resident else (TR, C)

    cparams = pltpu.CompilerParams(
        dimension_semantics=("parallel", "arbitrary"),   # split rows, not batch
        vmem_limit_bytes=vmem_limit,
    )
    itemsize = x.dtype.itemsize
    cost = pl.CostEstimate(
        flops=3 * B * R * C,
        transcendentals=0,
        bytes_accessed=2 * B * R * C * itemsize + R * C * 4,
    )

    if (not training) or dropout_rate == 0.0:
        pe_idx = (lambda r, b: (0, 0)) if pe_resident else (lambda r, b: (r, 0))
        out2 = pl.pallas_call(
            _pe_add_kernel,
            out_shape=jax.ShapeDtypeStruct((B, R, C), out_dtype),
            grid_spec=pltpu.PrefetchScalarGridSpec(
                num_scalar_prefetch=0,
                grid=grid,
                in_specs=[
                    pl.BlockSpec((1, TR, C), lambda r, b: (b, r, 0)),
                    pl.BlockSpec(pe_block, pe_idx),
                ],
                out_specs=pl.BlockSpec((1, TR, C), lambda r, b: (b, r, 0)),
            ),
            compiler_params=cparams,
            cost_estimate=cost,
        )(x2, pe2)
    else:
        # Training path: in-kernel hardware-PRNG inverted dropout.
        # TODO(synk): RNG stream differs from torch.nn.Dropout; semantics
        # (zero with prob p, scale by 1/(1-p)) match.
        rate = float(dropout_rate)
        threshold = min(int(rate * 4294967296.0), 4294967295)
        kernel = functools.partial(
            _pe_add_dropout_kernel, threshold=threshold, scale=1.0 / (1.0 - rate)
        )
        pe_idx = (lambda r, b, s: (0, 0)) if pe_resident else (lambda r, b, s: (r, 0))
        seed_arr = jnp.asarray([seed], dtype=jnp.int32)
        out2 = pl.pallas_call(
            kernel,
            out_shape=jax.ShapeDtypeStruct((B, R, C), out_dtype),
            grid_spec=pltpu.PrefetchScalarGridSpec(
                num_scalar_prefetch=1,
                grid=grid,
                in_specs=[
                    pl.BlockSpec((1, TR, C), lambda r, b, s: (b, r, 0)),
                    pl.BlockSpec(pe_block, pe_idx),
                ],
                out_specs=pl.BlockSpec((1, TR, C), lambda r, b, s: (b, r, 0)),
            ),
            compiler_params=cparams,
            cost_estimate=cost,
        )(seed_arr, x2, pe2)

    out = out2.reshape(B, S, D_pad)
    if D_pad != D:
        out = out[:, :, :D]
    return out


# ----------------------------------------------------------------------------
# Demo / self-check
# ----------------------------------------------------------------------------
if __name__ == "__main__":
    key = jax.random.PRNGKey(0)
    MAX_LEN = 64
    DROPOUT = 0.1

    # ---- Case 1: S*D multiple of 128 (lane-dense reflatten path), fp32 ----
    B, S, D = 2, 8, 32
    k1, k2, k3 = jax.random.split(key, 3)
    x = jax.random.normal(k1, (B, S, D), dtype=jnp.float32)
    pe_table = make_pe_table(MAX_LEN, D, dtype=jnp.float32)

    out_eval = positional_encoding(x, pe_table, dropout_rate=DROPOUT, training=False)
    out_eval = jax.block_until_ready(out_eval)
    ref = x + pe_table[:S, :][None, :, :]
    np.testing.assert_allclose(np.asarray(out_eval), np.asarray(ref),
                               rtol=1e-6, atol=1e-6)

    # ---- Case 2: padded-lane fallback (neither D nor S*D multiple of 128) ----
    Bp, Sp, Dp = 2, 7, 20
    xp = jax.random.normal(k2, (Bp, Sp, Dp), dtype=jnp.float32)
    pe_p = make_pe_table(MAX_LEN, Dp, dtype=jnp.float32)
    out_p = positional_encoding(xp, pe_p, dropout_rate=DROPOUT, training=False)
    out_p = jax.block_until_ready(out_p)
    ref_p = xp + pe_p[:Sp, :][None, :, :]
    np.testing.assert_allclose(np.asarray(out_p), np.asarray(ref_p),
                               rtol=1e-6, atol=1e-6)

    # ---- Case 3: bf16 activations (sublane-packing path, fp32 in-kernel add) ----
    xb = jax.random.normal(k3, (B, S, D), dtype=jnp.float32).astype(jnp.bfloat16)
    out_b = positional_encoding(xb, pe_table, dropout_rate=DROPOUT, training=False)
    out_b = jax.block_until_ready(out_b)
    ref_b = (xb.astype(jnp.float32) + pe_table[:S, :][None, :, :]).astype(jnp.bfloat16)
    np.testing.assert_allclose(np.asarray(out_b, dtype=np.float32),
                               np.asarray(ref_b, dtype=np.float32),
                               rtol=0, atol=1e-2)

    # ---- Case 4: training mode (TPU hardware PRNG inverted dropout) ----
    if jax.default_backend() == "tpu":
        out_train = positional_encoding(
            x, pe_table, dropout_rate=DROPOUT, training=True, seed=123
        )
        out_train = jax.block_until_ready(out_train)
        assert out_train.shape == (B, S, D)
        assert bool(jnp.all(jnp.isfinite(out_train)))

    print("KERNEL_OK")
</pallas_src>

<mosaic_0001>
module attributes {stable_mosaic.version = 11 : i64} {
  func.func @_pe_add_kernel(%arg0: i32, %arg1: i32, %arg2: memref<1x1x256xf32, #tpu.memory_space<vmem>>, %arg3: memref<1x256xf32, #tpu.memory_space<vmem>>, %arg4: memref<1x1x256xf32, #tpu.memory_space<vmem>>) attributes {dimension_semantics = [#tpu.dimension_semantics<parallel>, #tpu.dimension_semantics<arbitrary>], iteration_bounds = array<i64: 1, 2>, scalar_prefetch = 0 : i64, scratch_operands = 0 : i64, tpu.core_type = #tpu.core_type<tc>, window_params = [{transform_indices = @transform_0, window_bounds = array<i64: 1, 1, 256>}, {pipeline_mode = #tpu.pipeline_mode<synchronous>, transform_indices = @transform_1, window_bounds = array<i64: 1, 256>}, {transform_indices = @transform_2, window_bounds = array<i64: 1, 1, 256>}]} {
    %c0 = arith.constant 0 : index
    %c0_0 = arith.constant 0 : index
    %0 = vector.load %arg3[%c0, %c0_0] : memref<1x256xf32, #tpu.memory_space<vmem>>, vector<1x256xf32>
    %c0_1 = arith.constant 0 : index
    %c0_2 = arith.constant 0 : index
    %c0_3 = arith.constant 0 : index
    %1 = vector.load %arg2[%c0_1, %c0_2, %c0_3] : memref<1x1x256xf32, #tpu.memory_space<vmem>>, vector<1x1x256xf32>
    %2 = vector.shape_cast %0 : vector<1x256xf32> to vector<1x1x256xf32>
    %3 = arith.addf %1, %2 : vector<1x1x256xf32>
    %c0_4 = arith.constant 0 : index
    %c0_5 = arith.constant 0 : index
    %c0_6 = arith.constant 0 : index
    %4 = vector.load %arg4[%c0_4, %c0_5, %c0_6] : memref<1x1x256xf32, #tpu.memory_space<vmem>>, vector<1x1x256xf32>
    tpu.vector_store %arg4[%c0_4, %c0_5, %c0_6], %3 {strides = array<i32>} : memref<1x1x256xf32, #tpu.memory_space<vmem>>, vector<1x1x256xf32>,
    return
  }
  func.func @transform_0(%arg0: i32, %arg1: i32) -> (i32, i32, i32) {
    %c0_i32 = arith.constant 0 : i32
    %c0_i32_0 = arith.constant 0 : i32
    return %arg1, %arg0, %c0_i32 : i32, i32, i32
  }
  func.func @transform_1(%arg0: i32, %arg1: i32) -> (i32, i32) {
    %c0_i32 = arith.constant 0 : i32
    %c0_i32_0 = arith.constant 0 : i32
    %c0_i32_1 = arith.constant 0 : i32
    return %c0_i32, %c0_i32_0 : i32, i32
  }
  func.func @transform_2(%arg0: i32, %arg1: i32) -> (i32, i32, i32) {
    %c0_i32 = arith.constant 0 : i32
    %c0_i32_0 = arith.constant 0 : i32
    return %arg1, %arg0, %c0_i32 : i32, i32, i32
  }
}

</mosaic_0001>

<bundles_post_ra>
// kernel: tpu_custom_call.1
= control target key start
LH: loop header
LB: loop body
LE: loop exit
PB: predicated region body
PF: predicated region fallthrough
CT: control target
= control target key end

     0   :  { %7 = vsyncpa [#allocation3], 0  ;;  %s713_s0 = inlined_call_operand.hbm [shape: f32[2,1,256], index: 0, kind: input, shape index: {}]   ;;  %s714_s1 = inlined_call_operand.hbm [shape: f32[1,256], index: 1, kind: input, shape index: {}]   ;;  %s715_s2 = inlined_call_operand.hbm [shape: f32[2,1,256], index: 2, kind: output, shape index: {}]  }
   0x1   :  { %9 = vsyncpa [#allocation3 + $0x1], 0 }
   0x2   :  { %10 = vsyncpa [#allocation6], 0 }
   0x3   :  { %11 = vsyncpa [#allocation4], 0 }
   0x4   :  { %13 = vsyncpa [#allocation4 + $0x1], 0  ;;  %s564_s9 = smov 0   ;;  %s566_s10 = smov 0  }
   0x5   :  { %s568_s11 = smov 0   ;;  %s570_s12 = smov 0  }
   0x6   :  { %s572_s13 = smov 0   ;;  %s574_s14 = smov 0  }
   0x7 LB: > { %s312_s15 = sadd.s32 4294967295, %s546_s14   ;;  %s313_s16 = sadd.s32 4294967294, %s546_s14   ;;  %s546_s14 = sphi %s574_s14, %s19_s14   ;;  %s542_s13 = sphi %s572_s13, %s727_s13   ;;  %s538_s12 = sphi %s570_s12, %s726_s12   ;;  %s534_s11 = sphi %s568_s11, %s725_s11   ;;  %s530_s10 = sphi %s566_s10, %s724_s10   ;;  %s526_s9 = sphi %s564_s9, %s723_s9  }
   0x8   : > { %p53_p0 = scmp.ne.s32.totalorder %s530_s10, %s526_s9  ;;  %p598_p1 = scmp.eq.s32.totalorder %s312_s15, 0 }
   0x9   : > { %p602_p2 = scmp.eq.s32.totalorder %s312_s15, 1  ;;  %p106_p3 = scmp.eq.s32.totalorder %s313_s16, 1 }
   0xa   : > { %p608_p4 = por %p598_p1, %p53_p0  ;;  %p314_p5 = scmp.ge.s32.totalorder %s546_s14, 1 }
   0xb   : > { %p613_p6 = por %p106_p3, %p53_p0  ;;  %p113_p7 = scmp.lt.s32.totalorder %s546_s14, 3 }
   0xc   : > { %s125_s23 = sshll.u32 %s714_s1, 4  ;;  %p316_p9 = scmp.ge.s32.totalorder %s546_s14, 2  ;;  %s126_s23 = int_to_ptr.hbm [resolvable:$true] %s125_s23 }
   0xd   : > { %p621_p8 = pnand %p314_p5, %p113_p7  ;;  %s548_s25 = smov [#allocation5]  }
   0xe   : > { %s127_s26 = sshll.u32 %s548_s25, 4  ;;  %s28_s27 = sadd.s32 1, %s542_s13  ;;  %s128_s26 = int_to_ptr.vmem [resolvable:$true] %s127_s26 }
   0xf   : > { %p335_p10 = pneg %p621_p8  ;;  %p29_p12 = scmp.ge.s32.totalorder %s28_s27, 2 }
  0x10   : > { %s40_s28 = sadd.s32 1, %s534_s11  ;;  %p47_p13 = scmp.ne.s32.totalorder %s534_s11, %s530_s10 }
  0x11   : > { %p336_p11 = pnand %p335_p10, %p598_p1  ;;  %p48_p0 = scmp.eq.s32.totalorder %s546_s14, 0 }
  0x12   : > { %s729_s27 = smov (%p29_p12, %s28_s27), 0  ;;  %p643_p5 = por %p602_p2, %p47_p13 }
  0x13   : > { %338 = dma.hbm_to_vmem [thread:$0]  (!%p336_p11), %s126_s23, 32, %s128_s26, [#allocation6]  }
  0x14   : > { %p637_p3 = por %p48_p0, %p47_p13  ;;  %s35_s3 = ssub.s32 %s542_s13, %s729_s27 }
  0x15   : > { %p348_p7 = scmp.lt.s32.totalorder %s546_s14, 2  ;;  %p38_p10 = scmp.eq.s32.totalorder %s35_s3, 0 }
  0x16   : > { %s138_s4 = sand.u32 1, %s534_s11   ;;  %s318_s7 = sshll.u32 %s542_s13, 1 }
  0x17   : > { %s317_s5 = sshll.u32 %s138_s4, 1  ;;  %s148_s16 = scalar_lea.hbm %s713_s0, %s318_s7 }
  0x18   : > { %s652_s6 = scalar_select %p38_p10, %s534_s11, %s40_s28  }
  0x19   : > { %s142_s21 = scalar_lea.vmem [#allocation2], %s317_s5  ;;  %s150_s18 = sshll.u32 %s148_s16, 4  ;;  %s151_s18 = int_to_ptr.hbm [resolvable:$true] %s150_s18 }
  0x1a   : > { %s152_s22 = sshll.u32 %s142_s21, 4  ;;  %p340_p2 = pnand %p348_p7, %p637_p3  ;;  %s153_s22 = int_to_ptr.vmem [resolvable:$true] %s152_s22 }
  0x1b   : > { %s139_s23 = scalar_lea.sflag [#allocation3], %s138_s4  ;;  %161 = sbr.rel (%p621_p8) target bundleno = 50 (0x32), region = 28 }
  0x1c   : > { %342 = dma.hbm_to_vmem [thread:$0]  (!%p340_p2), %s151_s18, 32, %s153_s22, %s139_s23  }
  0x1d   : > { %s663_s25 = sand.u32 (!%p621_p8), 1, %s530_s10  }
  0x1e   : > { %s320_s26 = sshll.u32 (!%p621_p8), %s663_s25, 1  ;;  %s164_s28 = scalar_lea.sflag (!%p621_p8), [#allocation3], %s663_s25 }
  0x1f   : > { %s167_s3 = scalar_lea.vmem (!%p621_p8), [#allocation2], %s320_s26 }
  0x20   : > { %513 = dma.done.wait (%p608_p4), %s164_s28, 32  }
  0x21   : > { %515 = vsyncadd (%p608_p4), %s164_s28, 4294967264 }
  0x22   : > { %517 = dma.done.wait (%p598_p1), [#allocation6], 32  }
  0x23   : > { %519 = vsyncadd (%p598_p1), [#allocation6], 4294967264  ;;  %s324_s24 = sshll.u32 %s538_s12, 1  ;;  %v197_v0 = vlaneseq  ;;  %s193_s7 = scalar_lea.vmem [#allocation7], %s320_s26  ;;  %v194_v1 = vld [vmem:[#allocation5] sm:$0x3] }
  0x24   : > { %s215_s5 = scalar_lea.hbm %s715_s2, %s324_s24  ;;  %s217_s8 = sshll.u32 %s193_s7, 4  ;;  %v195_v2 = vld [vmem:[%s167_s3] sm:$0x3]  ;;  %s218_s8 = int_to_ptr.vmem [resolvable:$true] %s217_s8 }
  0x25   : > { %s219_s15 = sshll.u32 %s215_s5, 4  ;;  %vm199_vm0 = vcmp.lt.s32.totalorder %v197_v0, 256  ;;  %v196_v3 = vadd.f32 %v195_v2, %v194_v1  ;;  %s203_s17 = scalar_lea.sflag [#allocation4], %s663_s25  ;;  %s220_s15 = int_to_ptr.hbm [resolvable:$true] %s219_s15 }
  0x26   : > { %s474_s19 = sshra.s32 %s220_s15, 4  ;;  %s480_s22 = scalar_lea.hbm %s715_s2, 4  ;;  %s475_s19 = int_to_ptr.hbm [resolvable:$true] %s474_s19 }
  0x27   : > { %201 = vst.msk [vmem:[%s193_s7] sm:$0x3] %vm199_vm0, %v196_v3  ;;  %s476_s12 = scalar_lea.hbm %s475_s19, 2  ;;  %p481_p11 = scmp.lt.s32.totalorder %s475_s19, %s715_s2 }
  0x28   : > { %p477_p1 = scmp.ne.s32.totalorder %s475_s19, %s476_s12  ;;  %p482_p12 = scmp.lt.s32.totalorder %s480_s22, %s476_s12 }
  0x2a   : > { %p478_p4 = pnand %p477_p1, %p643_p5  ;;  %p483_p13 = por %p482_p12, %p481_p11 }
  0x2c   : > { %p479_p8 = pneg %p478_p4 }
  0x2e   : > { %p484_p0 = pnand %p483_p13, %p479_p8 }
  0x30   : > { %487 = shalt.err (!%p484_p0)
}
  0x31   : > { %333 = dma.vmem_to_hbm [thread:$0]  (%p643_p5), %s218_s8, 32, %s220_s15, %s203_s17  }
  0x32 PF: > { %s231_s25 = sand.u32 1, %s526_s9   ;;  %p344_p3 = pnand %p316_p9, %p613_p6 }
  0x33   : > { %s232_s26 = scalar_lea.sflag [#allocation4], %s231_s25 }
  0x34   : > { %p345_p7 = pneg %p344_p3 }
  0x36   : > { %521 = dma.done.wait (%p345_p7), %s232_s26, 32  }
  0x37   : > { %523 = vsyncadd (%p345_p7), %s232_s26, 4294967264  ;;  %s19_s14 = sadd.s32 1, %s546_s14   ;;  %s723_s9 = smov %s530_s10 }
  0x38   : > { %p16_p10 = scmp.ge.s32.totalorder %s19_s14, 4   ;;  %s724_s10 = smov %s534_s11 }
  0x39   : > { %s725_s11 = smov %s652_s6  ;;  %s726_s12 = smov %s542_s13 }
  0x3a   : > { %s727_s13 = smov %s729_s27  ;;  %18 = sbr.rel (!%p16_p10) target bundleno = 7 (0x7), region = 77 }
  0x3f   :  { %238 = vsyncpa [#allocation3], 1 }
  0x40   :  { %240 = vsyncpa [#allocation3 + $0x1], 1 }
  0x41   :  { %241 = vsyncpa [#allocation6], 1 }
  0x42   :  { %242 = vsyncpa [#allocation4], 1 }
  0x43   :  { %244 = vsyncpa [#allocation4 + $0x1], 1 }

</bundles_post_ra>
